<compile_context>
chip_gen: v7x
topology: tpu7x:2x2x1
jax: 0.10.0
libtpu: 0.0.40
codegen_flags: <defaults>
</compile_context>

<pallas_src>
import jax
import jax.numpy as jnp
from jax.experimental import pallas as pl
from jax.experimental.pallas import tpu as pltpu

ALPHA = 0.25
GAMMA = 2.0  # fixed; the kernel uses an explicit square.
LANES = 128
SUBLANES = 8
MAX_TILE_ROWS = 4096              # 4096x128 f32 = 2 MiB per input block.
VMEM_LIMIT_BYTES = 40 * 1024 * 1024  # covers 8 MiB pipeline buffers + in-kernel temporaries.


def _round_up(x: int, m: int) -> int:
    return ((x + m - 1) // m) * m


def _make_focal_kernel(*, rows, tile_rows, steps, mask_partial, binary_targets):
    """Builds the kernel with static config baked in (no scalar prefetch needed)."""

    def kernel(p_ref, t_ref, out_ref):
        c = pl.program_id(0)
        i = pl.program_id(1)

        @pl.when(i == 0)
        def _():
            out_ref[...] = jnp.zeros_like(out_ref)

        # Upcast after the (possibly narrower-dtype) load; v5e has no bf16 VALU.
        p = p_ref[...].astype(jnp.float32)
        t = t_ref[...].astype(jnp.float32)

        # BCELoss(reduction='none') with PyTorch's log clamp at -100:
        #   bce = -(t*log p + (1-t)*log(1-p)) = -s, with
        #   s   = log(1-p) + t*(log p - log(1-p))
        log_p = jnp.maximum(jnp.log(p), -100.0)
        log_1mp = jnp.maximum(jnp.log(1.0 - p), -100.0)
        s = log_1mp + t * (log_p - log_1mp)

        if binary_targets:
            # For hard {0,1} targets, exp(-bce) == t*p + (1-t)*(1-p): pure VPU, no EUP.
            pt = t * p + (1.0 - t) * (1.0 - p)
        else:
            pt = jnp.exp(s)  # pt = exp(-bce); exact PyTorch semantics (soft labels too).

        omp = 1.0 - pt
        # focal = alpha*(1-pt)^2*bce = -alpha*(1-pt)^2*s.  alpha and the minus sign are
        # applied once to the final scalar in the wrapper; accumulate (1-pt)^2*s here.
        contrib = omp * omp * s

        if mask_partial:
            # The last block may run past `rows`; the not-copied region of the VMEM
            # buffer is garbage, so zero its contribution.  Row-granular mask suffices
            # (the flat array is already a multiple of 128 lanes).
            block_row0 = (c * steps + i) * tile_rows
            row_ids = jax.lax.broadcasted_iota(jnp.int32, contrib.shape, 0)
            contrib = jnp.where(row_ids < (rows - block_row0), contrib, 0.0)

        # Per-lane/sublane partial accumulation: pure vreg adds (VPU); the single
        # cross-lane reduction to a scalar is deferred to XLA outside the kernel.
        out_ref[...] += contrib.reshape(-1, SUBLANES, LANES).sum(axis=0)

    return kernel


def focal_loss_pallas(inputs: jax.Array, targets: jax.Array, *,
                      alpha: float = ALPHA,
                      binary_targets: bool = False,
                      max_tile_rows: int = MAX_TILE_ROWS) -> jax.Array:
    """FocalLoss(alpha, gamma=2.0).forward(inputs, targets); returns a scalar float32.

    inputs/targets: matching shapes, probabilities in [0, 1] (BCELoss, not logits).
    Set binary_targets=True only for hard {0,1} targets (drops one exp per element).
    """
    assert inputs.shape == targets.shape
    n_elems = inputs.size

    p_flat = inputs.reshape(-1)
    t_flat = targets.reshape(-1)

    # Only a sub-128 remainder is padded (p=1, t=1 -> zero contribution via the -100
    # log clamp).  Evenly-tiling inputs never touch jnp.pad.
    rem = n_elems % LANES
    if rem:
        # TODO(synk): this XLA pad re-reads/writes the arrays; fires only when the
        # flattened size isn't a multiple of 128 lanes.
        n_pad = LANES - rem
        p_flat = jnp.pad(p_flat, (0, n_pad), constant_values=1.0)
        t_flat = jnp.pad(t_flat, (0, n_pad), constant_values=1.0)

    rows = p_flat.size // LANES
    p2d = p_flat.reshape(rows, LANES)   # contiguous reshape: free (no HBM traffic)
    t2d = t_flat.reshape(rows, LANES)

    tile_rows = min(max_tile_rows, _round_up(rows, SUBLANES))
    total_tiles = pl.cdiv(rows, tile_rows)
    # Split across 2 cores only when the tile count divides evenly, so no block ever
    # starts past the end of the array (megacore split on v7x via the documented
    # "parallel" dimension semantics; a trivial sequential loop on 1-TC v5e/v6e).
    ncores = 2 if (total_tiles >= 2 and total_tiles % 2 == 0) else 1
    steps = total_tiles // ncores
    mask_partial = (rows % tile_rows) != 0

    kernel = _make_focal_kernel(rows=rows, tile_rows=tile_rows, steps=steps,
                                mask_partial=mask_partial,
                                binary_targets=binary_targets)

    tile_spec = pl.BlockSpec((tile_rows, LANES), lambda c, i: (c * steps + i, 0))
    out_spec = pl.BlockSpec((SUBLANES, LANES), lambda c, i: (c, 0))

    in_bytes = n_elems * (p2d.dtype.itemsize + t2d.dtype.itemsize)
    partials = pl.pallas_call(
        kernel,
        out_shape=jax.ShapeDtypeStruct((ncores * SUBLANES, LANES), jnp.float32),
        grid_spec=pltpu.PrefetchScalarGridSpec(
            num_scalar_prefetch=0,
            grid=(ncores, steps),
            in_specs=[tile_spec, tile_spec],
            out_specs=out_spec,
        ),
        compiler_params=pltpu.CompilerParams(
            dimension_semantics=("parallel", "arbitrary"),
            vmem_limit_bytes=VMEM_LIMIT_BYTES,
        ),
        cost_estimate=pl.CostEstimate(
            flops=12 * n_elems,
            transcendentals=(2 if binary_targets else 3) * n_elems,
            bytes_accessed=in_bytes + ncores * SUBLANES * LANES * 4,
        ),
    )(p2d, t2d)

    # Kernel accumulated (1-pt)^2 * s with bce = -s; fold the sign and alpha here and
    # divide by the true (unpadded) element count.
    return (-alpha) * jnp.sum(partials) / jnp.float32(n_elems)


def focal_loss_ref(inputs, targets, alpha=ALPHA, gamma=GAMMA):
    p = inputs.astype(jnp.float32)
    t = targets.astype(jnp.float32)
    log_p = jnp.maximum(jnp.log(p), -100.0)
    log_1mp = jnp.maximum(jnp.log(1.0 - p), -100.0)
    bce = -(t * log_p + (1.0 - t) * log_1mp)
    pt = jnp.exp(-bce)
    return jnp.mean(alpha * (1.0 - pt) ** gamma * bce)


if __name__ == "__main__":
    key = jax.random.PRNGKey(0)
    k1, k2, k3, k4 = jax.random.split(key, 4)

    # Small shapes consistent with a typical dense-prediction use of FocalLoss.
    shape = (2, 4, 16, 16)  # (B, C, H, W); loss is elementwise so layout-free.
    inputs = jax.nn.sigmoid(jax.random.normal(k1, shape, dtype=jnp.float32))
    targets = jax.random.bernoulli(k2, p=0.3, shape=shape).astype(jnp.float32)

    loss = jax.block_until_ready(focal_loss_pallas(inputs, targets))
    ref = jax.block_until_ready(focal_loss_ref(inputs, targets))
    assert jnp.allclose(loss, ref, rtol=2e-5, atol=2e-6), (loss, ref)

    # Exercise the multi-step / 2-core / masked-partial-final-tile path by forcing
    # tiny tiles: 3840 elems = 30 rows of 128 -> 4 tiles of 8 rows, last tile partial.
    shape2 = (3, 5, 16, 16)
    inputs2 = jax.nn.sigmoid(jax.random.normal(k3, shape2, dtype=jnp.float32))
    targets2 = jax.random.bernoulli(k4, p=0.5, shape=shape2).astype(jnp.float32)
    loss2 = jax.block_until_ready(focal_loss_pallas(inputs2, targets2, max_tile_rows=8))
    ref2 = jax.block_until_ready(focal_loss_ref(inputs2, targets2))
    assert jnp.allclose(loss2, ref2, rtol=2e-5, atol=2e-6), (loss2, ref2)

    # Binary-target fast path (no exp); mathematically identical for {0,1} targets.
    loss_b = jax.block_until_ready(focal_loss_pallas(inputs, targets, binary_targets=True))
    assert jnp.allclose(loss_b, ref, rtol=1e-4, atol=1e-5), (loss_b, ref)

    print("KERNEL_OK")
</pallas_src>

<mosaic_0001>
module attributes {stable_mosaic.version = 11 : i64} {
  func.func @kernel(%arg0: i32, %arg1: i32, %arg2: memref<16x128xf32, #tpu.memory_space<vmem>>, %arg3: memref<16x128xf32, #tpu.memory_space<vmem>>, %arg4: memref<8x128xf32, #tpu.memory_space<vmem>>) attributes {dimension_semantics = [#tpu.dimension_semantics<parallel>, #tpu.dimension_semantics<arbitrary>], iteration_bounds = array<i64: 1, 1>, scalar_prefetch = 0 : i64, scratch_operands = 0 : i64, tpu.core_type = #tpu.core_type<tc>, window_params = [{transform_indices = @transform_0, window_bounds = array<i64: 16, 128>}, {transform_indices = @transform_1, window_bounds = array<i64: 16, 128>}, {transform_indices = @transform_2, window_bounds = array<i64: 8, 128>}]} {
    %c0_i32 = arith.constant 0 : i32
    %0 = arith.cmpi eq, %arg1, %c0_i32 : i32
    %1 = arith.extui %0 : i1 to i32
    %c0_i32_0 = arith.constant 0 : i32
    %2 = arith.cmpi ne, %1, %c0_i32_0 : i32
    scf.if %2 {
      %cst_12 = arith.constant 0.000000e+00 : f32
      %26 = vector.broadcast %cst_12 : f32 to vector<8x128xf32>
      %c0_13 = arith.constant 0 : index
      %c0_14 = arith.constant 0 : index
      %27 = vector.load %arg4[%c0_13, %c0_14] : memref<8x128xf32, #tpu.memory_space<vmem>>, vector<8x128xf32>
      tpu.vector_store %arg4[%c0_13, %c0_14], %26 {strides = array<i32>} : memref<8x128xf32, #tpu.memory_space<vmem>>, vector<8x128xf32>,
    } else {
    }
    %c0 = arith.constant 0 : index
    %c0_1 = arith.constant 0 : index
    %3 = vector.load %arg2[%c0, %c0_1] : memref<16x128xf32, #tpu.memory_space<vmem>>, vector<16x128xf32>
    %c0_2 = arith.constant 0 : index
    %c0_3 = arith.constant 0 : index
    %4 = vector.load %arg3[%c0_2, %c0_3] : memref<16x128xf32, #tpu.memory_space<vmem>>, vector<16x128xf32>
    %5 = math.log %3 : vector<16x128xf32>
    %cst = arith.constant -1.000000e+02 : f32
    %6 = vector.broadcast %cst : f32 to vector<16x128xf32>
    %7 = arith.maximumf %5, %6 : vector<16x128xf32>
    %cst_4 = arith.constant 1.000000e+00 : f32
    %8 = vector.broadcast %cst_4 : f32 to vector<16x128xf32>
    %9 = arith.subf %8, %3 : vector<16x128xf32>
    %10 = math.log %9 : vector<16x128xf32>
    %cst_5 = arith.constant -1.000000e+02 : f32
    %11 = vector.broadcast %cst_5 : f32 to vector<16x128xf32>
    %12 = arith.maximumf %10, %11 : vector<16x128xf32>
    %13 = arith.subf %7, %12 : vector<16x128xf32>
    %14 = arith.mulf %4, %13 : vector<16x128xf32>
    %15 = arith.addf %12, %14 : vector<16x128xf32>
    %16 = math.exp %15 : vector<16x128xf32>
    %cst_6 = arith.constant 1.000000e+00 : f32
    %17 = vector.broadcast %cst_6 : f32 to vector<16x128xf32>
    %18 = arith.subf %17, %16 : vector<16x128xf32>
    %19 = arith.mulf %18, %18 : vector<16x128xf32>
    %20 = arith.mulf %19, %15 : vector<16x128xf32>
    %c0_7 = arith.constant 0 : index
    %c0_8 = arith.constant 0 : index
    %21 = vector.load %arg4[%c0_7, %c0_8] : memref<8x128xf32, #tpu.memory_space<vmem>>, vector<8x128xf32>
    %22 = vector.shape_cast %20 : vector<16x128xf32> to vector<2x8x128xf32>
    %cst_9 = arith.constant dense<0.000000e+00> : vector<8x128xf32>
    %23 = vector.multi_reduction <add>, %22, %cst_9 [0] : vector<2x8x128xf32> to vector<8x128xf32>
    %24 = arith.addf %21, %23 : vector<8x128xf32>
    %c0_10 = arith.constant 0 : index
    %c0_11 = arith.constant 0 : index
    %25 = vector.load %arg4[%c0_10, %c0_11] : memref<8x128xf32, #tpu.memory_space<vmem>>, vector<8x128xf32>
    tpu.vector_store %arg4[%c0_10, %c0_11], %24 {strides = array<i32>} : memref<8x128xf32, #tpu.memory_space<vmem>>, vector<8x128xf32>,
    return
  }
  func.func @transform_0(%arg0: i32, %arg1: i32) -> (i32, i32) {
    %c1_i32 = arith.constant 1 : i32
    %0 = arith.muli %arg0, %c1_i32 : i32
    %1 = arith.addi %0, %arg1 : i32
    %c0_i32 = arith.constant 0 : i32
    %c0_i32_0 = arith.constant 0 : i32
    return %1, %c0_i32 : i32, i32
  }
  func.func @transform_1(%arg0: i32, %arg1: i32) -> (i32, i32) {
    %c1_i32 = arith.constant 1 : i32
    %0 = arith.muli %arg0, %c1_i32 : i32
    %1 = arith.addi %0, %arg1 : i32
    %c0_i32 = arith.constant 0 : i32
    %c0_i32_0 = arith.constant 0 : i32
    return %1, %c0_i32 : i32, i32
  }
  func.func @transform_2(%arg0: i32, %arg1: i32) -> (i32, i32) {
    %c0_i32 = arith.constant 0 : i32
    %c0_i32_0 = arith.constant 0 : i32
    return %arg0, %c0_i32 : i32, i32
  }
}

</mosaic_0001>

<bundles_post_ra>
// kernel: tpu_custom_call.1
= control target key start
LH: loop header
LB: loop body
LE: loop exit
PB: predicated region body
PF: predicated region fallthrough
CT: control target
= control target key end

     0   :  { %7 = vsyncpa [#allocation3], 0  ;;  %s257_s0 = inlined_call_operand.hbm [shape: f32[16,128], index: 0, kind: input, shape index: {}]   ;;  %s258_s1 = inlined_call_operand.hbm [shape: f32[16,128], index: 1, kind: input, shape index: {}]   ;;  %s259_s2 = inlined_call_operand.hbm [shape: f32[8,128], index: 2, kind: output, shape index: {}]  }
   0x1   :  { %8 = vsyncpa [#allocation6], 0 }
   0x2   :  { %9 = vsyncpa [#allocation4], 0  ;;  %s201_s9 = smov [#allocation2]   ;;  %s129_s13 = scalar_lea.hbm %s257_s0, 256 }
   0x3   :  { %s19_s10 = sshll.u32 %s201_s9, 4  ;;  %p130_p0 = scmp.ne.s32.totalorder %s257_s0, %s129_s13  ;;  %s20_s10 = int_to_ptr.vmem [resolvable:$true] %s19_s10 }
   0x4   :  { %p133_p1 = scmp.lt.u32.totalorder %s129_s13, %s257_s0 }
   0x6   :  { %p135_p2 = pnand %p133_p1, %p130_p0 }
   0x8   :  { %138 = shalt.err (!%p135_p2)
}
   0x9   :  { %s139_s18 = scalar_lea.vmem %s20_s10, 256  ;;  %p144_p4 = scmp.lt.s32.totalorder %s20_s10, %s20_s10 }
   0xa   :  { %p140_p3 = scmp.ne.s32.totalorder %s20_s10, %s139_s18  ;;  %p145_p5 = scmp.lt.s32.totalorder %s139_s18, %s139_s18 }
   0xc   :  { %p146_p6 = por %p145_p5, %p144_p4 }
   0xe   :  { %p147_p7 = pnand %p146_p6, %p140_p3 }
  0x10   :  { %150 = shalt.err (!%p147_p7)
}
  0x11   :  { %s202_s19 = smov 128   ;;  %s203_s20 = smov 8  }
  0x12   :  { %25 = dma.hbm_to_vmem [thread:$0]  %s257_s0, 256, %s20_s10, [#allocation3], %s202_s19, %s202_s19, %s203_s20  }
  0x13   :  { %s204_s23 = smov [#allocation5]   ;;  %s151_s27 = scalar_lea.hbm %s258_s1, 256 }
  0x14   :  { %s35_s24 = sshll.u32 %s204_s23, 4  ;;  %p152_p8 = scmp.ne.s32.totalorder %s258_s1, %s151_s27  ;;  %s36_s24 = int_to_ptr.vmem [resolvable:$true] %s35_s24 }
  0x15   :  { %p155_p9 = scmp.lt.u32.totalorder %s151_s27, %s258_s1 }
  0x17   :  { %p157_p10 = pnand %p155_p9, %p152_p8 }
  0x19   :  { %160 = shalt.err (!%p157_p10)
}
  0x1a   :  { %s161_s4 = scalar_lea.vmem %s36_s24, 256  ;;  %p166_p12 = scmp.lt.s32.totalorder %s36_s24, %s36_s24 }
  0x1b   :  { %p162_p11 = scmp.ne.s32.totalorder %s36_s24, %s161_s4  ;;  %p167_p13 = scmp.lt.s32.totalorder %s161_s4, %s161_s4 }
  0x1d   :  { %p168_p0 = por %p167_p13, %p166_p12 }
  0x1f   :  { %p169_p1 = pnand %p168_p0, %p162_p11 }
  0x21   :  { %172 = shalt.err (!%p169_p1)
}
  0x22   :  { %41 = dma.hbm_to_vmem [thread:$0]  %s258_s1, 256, %s36_s24, [#allocation6], %s202_s19, %s202_s19, %s203_s20  }
  0x23   :  { %195 = dma.done.wait [#allocation3], 256  }
  0x24   :  { %196 = vsyncadd [#allocation3], 4294967040 }
  0x25   :  { %197 = dma.done.wait [#allocation6], 256  }
  0x26   :  { %198 = vsyncadd [#allocation6], 4294967040  ;;  %v57_v0 = vld [vmem:[#allocation2] sm:$0xff]  ;;  %v58_v1 = vld [vmem:[#allocation2 + $0x8] sm:$0xff]  ;;  %s205_s1 = smov [#allocation7]  }
  0x27   :  { %117 = vlog2.f32 %v57_v0  ;;  %v67_v2 = vsub.f32 1.0, %v57_v0  ;;  %v68_v3 = vsub.f32 1.0, %v58_v1  ;;  %v59_v15 = vld [vmem:[#allocation5] sm:$0xff]  ;;  %v60_v17 = vld [vmem:[#allocation5 + $0x8] sm:$0xff]  ;;  %s101_s6 = sshll.u32 %s205_s1, 4  ;;  %s102_s6 = int_to_ptr.vmem [resolvable:$true] %s101_s6 }
  0x28   :  { %119 = vlog2.f32 %v58_v1  ;;  %s173_s7 = scalar_lea.vmem %s102_s6, 128  ;;  %p178_p3 = scmp.lt.s32.totalorder %s102_s6, %s102_s6 }
  0x29   :  { %121 = vlog2.f32 %v67_v2  ;;  %p174_p2 = scmp.ne.s32.totalorder %s102_s6, %s173_s7  ;;  %p179_p4 = scmp.lt.s32.totalorder %s173_s7, %s173_s7 }
  0x2a   :  { %123 = vlog2.f32 %v68_v3 }
  0x2b   :  { %p180_p5 = por %p179_p4, %p178_p3 }
  0x2d   :  { %p181_p6 = pnand %p180_p5, %p174_p2 }
  0x31   :  { %v118_v4 = vpop.eup %117 }
  0x32   :  { %v120_v5 = vpop.eup %119  ;;  %v62_v6 = vmul.f32 0.6931472, %v118_v4 }
  0x33   :  { %v122_v7 = vpop.eup %121  ;;  %v64_v8 = vmul.f32 0.6931472, %v120_v5 }
  0x34   :  { %v124_v9 = vpop.eup %123  ;;  %v65_v10 = vmax.f32 %v62_v6, -100.0  ;;  %v70_v11 = vmul.f32 0.6931472, %v122_v7 }
  0x35   :  { %v66_v12 = vmax.f32 %v64_v8, -100.0  ;;  %v72_v13 = vmul.f32 0.6931472, %v124_v9 }
  0x36   :  { %v73_v14 = vmax.f32 %v70_v11, -100.0 }
  0x37   :  { %v74_v16 = vmax.f32 %v72_v13, -100.0 }
  0x38   :  { %v75_v18 = vsub.f32 %v65_v10, %v73_v14 }
  0x39   :  { %v76_v19 = vsub.f32 %v66_v12, %v74_v16 }
  0x3a   :  { %v77_v20 = vmul.f32 %v75_v18, %v59_v15 }
  0x3b   :  { %v78_v21 = vmul.f32 %v76_v19, %v60_v17 }
  0x3c   :  { %v79_v22 = vadd.f32 %v77_v20, %v73_v14 }
  0x3d   :  { %v80_v23 = vadd.f32 %v78_v21, %v74_v16 }
  0x3e   :  { %v81_v24 = vmul.f32 1.442695, %v79_v22 }
  0x3f   :  { %v83_v25 = vmul.f32 1.442695, %v80_v23 }
  0x40   :  { %125 = vpow2.f32 %v81_v24 }
  0x41   :  { %127 = vpow2.f32 %v83_v25 }
  0x4a   :  { %v126_v26 = vpop.eup %125 }
  0x4b   :  { %v128_v27 = vpop.eup %127  ;;  %v85_v28 = vsub.f32 1.0, %v126_v26 }
  0x4c   :  { %v86_v29 = vsub.f32 1.0, %v128_v27 }
  0x4d   :  { %v87_v30 = vmul.f32 %v85_v28, %v85_v28 }
  0x4e   :  { %v88_v31 = vmul.f32 %v86_v29, %v86_v29 }
  0x4f   :  { %v89_v32 = vmul.f32 %v87_v30, %v79_v22 }
  0x50   :  { %v90_v33 = vmul.f32 %v88_v31, %v80_v23 }
  0x52   :  { %v92_v34 = vadd.f32 %v90_v33, %v89_v32 }
  0x54   :  { %94 = vst [vmem:[#allocation7] sm:$0xff] %v92_v34 }
  0x55   :  { %184 = shalt.err (!%p181_p6)
}
  0x56   :  { %s185_s10 = scalar_lea.hbm %s259_s2, 128 }
  0x57   :  { %p186_p7 = scmp.ne.s32.totalorder %s259_s2, %s185_s10  ;;  %p189_p8 = scmp.lt.u32.totalorder %s185_s10, %s259_s2 }
  0x59   :  { %p191_p9 = pnand %p189_p8, %p186_p7 }
  0x5b   :  { %194 = shalt.err (!%p191_p9)
}
  0x5c   :  { %104 = dma.vmem_to_hbm [thread:$0]  %s102_s6, 128, %s259_s2, [#allocation4]  }
  0x5d   :  { %199 = dma.done.wait [#allocation4], 128  }
  0x5e   :  { %200 = vsyncadd [#allocation4], 4294967168 }
  0x5f   :  { %108 = vsyncpa [#allocation3], 1 }
  0x60   :  { %109 = vsyncpa [#allocation6], 1 }
  0x61   :  { %110 = vsyncpa [#allocation4], 1 }

</bundles_post_ra>
